<compile_context>
chip_gen: v5e
topology: v5e:2x2
jax: 0.10.0
libtpu: 0.0.40
codegen_flags: <defaults>
</compile_context>

<pallas_src>
import functools
import math

import jax
import jax.numpy as jnp
from jax import lax
from jax.experimental import pallas as pl
from jax.experimental.pallas import tpu as pltpu


# ----------------------------------------------------------------------------- utils
def _cdiv(a, b):
    return (a + b - 1) // b


def _round_up(a, b):
    return _cdiv(a, b) * b


def _vmem_capacity_bytes():
    try:
        return int(pltpu.get_tpu_info().vmem_capacity_bytes)
    except Exception:
        return 64 * 2**20  # conservative default (v7x per-TensorCore VMEM)


def _sublane_granule(dtype):
    # Sub-32-bit dtypes pack along sublanes: bf16 -> (16,128) tiles, int8/fp8 -> (32,128).
    return max(8, 32 // jnp.dtype(dtype).itemsize)


def _choose_tile_b(batch, per_row_pipelined_bytes, per_row_scratch_bytes,
                   resident_bytes, granule, vmem_cap, target_rows=512):
    """Pick the batch-tile size.

    * as large as fits the VMEM budget (pipelined x/out rows are double-buffered,
      resident weights counted twice because Pallas double-buffers inputs),
    * ~512 rows target (amortizes the ~0.35us/grid-step overhead; measured tile
      sweeps reach >=85% of HBM roofline around 512 on v6e),
    * at least 2 grid steps when the batch allows (v7x has 2 TensorCores and the
      batch axis is marked "parallel"),
    * rounded to the dtype sublane granule while minimizing padding waste.
    """
    avail = max(0, vmem_cap - 2 * resident_bytes - (4 << 20))
    per_row = 2 * per_row_pipelined_bytes + per_row_scratch_bytes
    fit = max(granule, ((avail // max(per_row, 1)) // granule) * granule)
    tile = min(target_rows, fit)
    if batch > granule:                       # guarantee grid >= 2 so both v7x TCs work
        tile = min(tile, _round_up(_cdiv(batch, 2), granule))
    tile = min(tile, _round_up(batch, granule))
    tile = max(tile, granule)
    ntiles = _cdiv(batch, tile)               # re-split evenly to minimize pad waste
    tile = _round_up(_cdiv(batch, ntiles), granule)
    return tile


# --------------------------------------------------------------------------- kernels
def _dense_kernel(x_ref, w_ref, b_ref, o_ref):
    # x_ref: (TILE_B, n)   w_ref: (n, out) resident   b_ref: (1, out) resident
    # Single fused-K MXU dot, bias fused, one lane-dense store per batch tile.
    acc = jnp.dot(x_ref[...], w_ref[...], preferred_element_type=jnp.float32)
    o_ref[...] = (acc + b_ref[...].astype(jnp.float32)).astype(o_ref.dtype)


def _block_kernel(x_ref, w1p_ref, w2t_ref, b_ref, o_ref, mid_ref, *,
                  nblocks, w1_in, w1_out, w2_out, cgrp):
    """True block-diagonal monarch (no densified stage-2 weights).

    stage 1 : per input block k1, ONE (TILE_B, w1_in) @ (w1_in, w1_out) dot whose
              output columns are already grouped by the stage-2 block k2 (the monarch
              stride-nblocks permutation was folded into w1p's column order on the
              host); the width-cgrp groups are scattered into the VMEM `mid` scratch
              so every stage-2 block later reads a contiguous (TILE_B, w1_out) tile.
    stage 2 : per output block k2, ONE full-K (TILE_B, w1_out) @ (w1_out, w2_out) dot
              (no accumulator chain), bias fused, block-ordered contiguous store.

    nblocks is small by construction (typically 4) so the static Python loops unroll
    to a handful of dots; for very large nblocks switch to lax.fori_loop with pl.ds
    slices to bound code size / vreg live ranges (review item 10).
    """
    f32 = jnp.float32
    # ---- stage 1 + monarch permutation (folded into w1p column order) ----
    for k1 in range(nblocks):
        xk = x_ref[:, k1 * w1_in:(k1 + 1) * w1_in]
        p1 = jnp.dot(xk, w1p_ref[k1], preferred_element_type=f32)
        p1 = p1.astype(mid_ref.dtype)
        for k2 in range(nblocks):
            dst = k2 * w1_out + k1 * cgrp
            mid_ref[:, dst:dst + cgrp] = p1[:, k2 * cgrp:(k2 + 1) * cgrp]
    # ---- stage 2: block-diagonal, one full-K dot per output block ----
    for k2 in range(nblocks):
        m = mid_ref[:, k2 * w1_out:(k2 + 1) * w1_out]
        blk = jnp.dot(m, w2t_ref[k2], preferred_element_type=f32)
        blk = blk + b_ref[:, k2 * w2_out:(k2 + 1) * w2_out].astype(f32)
        o_ref[:, k2 * w2_out:(k2 + 1) * w2_out] = blk.astype(o_ref.dtype)


# --------------------------------------------------------------------- pure-JAX ref
def monarch_reference(x, w1, w2, bias=None):
    """Pure-JAX transcription of the PyTorch `monarch` + optional bias."""
    orig_shape = x.shape
    xv = x.reshape(-1, x.shape[-1])
    batch, n = xv.shape
    nblocks, w1_out, _ = w1.shape
    _, w2_out, _ = w2.shape
    xv = xv.reshape(batch, nblocks, n // nblocks)
    out1 = jnp.einsum('kqp,bkp->bkq', w1, xv)
    out1 = jnp.swapaxes(out1.reshape(batch, w1_out, nblocks), -1, -2)
    out1 = jnp.einsum('kqp,bkp->bqk', w2, out1)
    out = out1.reshape(orig_shape[:-1] + (w2_out * nblocks,))
    if bias is not None:
        out = out + bias
    return out


# ---------------------------------------------------------------------------- entry
def monarch_forward(x, w1, w2, bias=None, *, tile_b_target=512,
                    dense_weight_max_bytes=16 * 2**20):
    """Exact JAX/Pallas mirror of MonarchLinear.forward."""
    orig_shape = x.shape
    n = x.shape[-1]
    xv = x.reshape(-1, n)
    batch = xv.shape[0]

    nblocks, w1_out, w1_in = w1.shape
    d, w2_out, w2_in = w2.shape
    assert nblocks == d
    assert n % nblocks == 0 and n // nblocks == w1_in and w1_out == w2_in
    out_features = nblocks * w2_out
    out_dtype = x.dtype
    compute_dtype = x.dtype               # bf16 in -> bf16 weights on the MXU fast path
    itemsize = jnp.dtype(compute_dtype).itemsize
    granule = _sublane_granule(compute_dtype)
    vmem_cap = int(_vmem_capacity_bytes() * 0.85)

    # Path selection: tiny per-block dims starve the MXU (K=8 => <=6% utilization), so
    # fold everything into one dense (n, out) matrix there; otherwise run the true
    # block-diagonal kernel (needs w1_out % nblocks == 0 to fold the permutation).
    can_block = (w1_out % nblocks == 0)
    small_blocks = min(w1_in, w1_out, w2_out) < 128
    use_dense = (not can_block) or (small_blocks and
                                    n * out_features * itemsize <= dense_weight_max_bytes)

    if bias is None:
        bias_flat = jnp.zeros((out_features,), jnp.float32)
    else:
        bias_flat = bias.reshape(out_features).astype(jnp.float32)

    if use_dense:
        # Fold block-diag stage 1 + stride-nblocks permutation + block-diag stage 2
        # into a single dense (n, out_features) matrix: weight-sized host/XLA work,
        # no x-sized preprocessing.
        w_dense = monarch_reference(jnp.eye(n, dtype=jnp.float32), w1, w2, None)
        w_dense = w_dense.astype(compute_dtype)
        b_arr = bias_flat.reshape(1, out_features)
        operands = (xv, w_dense, b_arr)
        resident_bytes = (w_dense.size * w_dense.dtype.itemsize
                          + b_arr.size * b_arr.dtype.itemsize)
        per_row_scratch = 0
        kernel = _dense_kernel
        weight_specs = [
            pl.BlockSpec((n, out_features), lambda i: (0, 0)),          # resident
            pl.BlockSpec((1, out_features), lambda i: (0, 0)),          # resident
        ]
        scratch = []
    else:
        cgrp = w1_out // nblocks
        # Stage-1 weights, transposed and with output columns re-ordered so that
        # column (k2*cgrp + j) of block k1 is the reference's mid[:, k2, k1*cgrp + j]
        # (i.e. original q1 = j*nblocks + k2).  This folds the monarch permutation
        # into weight layout -> no in-kernel lane swizzle, no densified w2.
        w1t = jnp.swapaxes(w1, 1, 2)                                    # (nb, in, out1)
        w1p = w1t.reshape(nblocks, w1_in, cgrp, nblocks)
        w1p = jnp.swapaxes(w1p, 2, 3).reshape(nblocks, w1_in, w1_out)
        w2t = jnp.swapaxes(w2, 1, 2)                                    # (nb, out1, out2)
        w1p = w1p.astype(compute_dtype)
        w2t = w2t.astype(compute_dtype)
        # Bias permuted to the kernel's block-ordered output columns (k2*w2_out + q2).
        b_arr = bias_flat.reshape(w2_out, nblocks).T.reshape(1, out_features)
        operands = (xv, w1p, w2t, b_arr)
        resident_bytes = (w1p.size * w1p.dtype.itemsize
                          + w2t.size * w2t.dtype.itemsize
                          + b_arr.size * b_arr.dtype.itemsize)
        per_row_scratch = nblocks * w1_out * itemsize
        kernel = functools.partial(_block_kernel, nblocks=nblocks, w1_in=w1_in,
                                   w1_out=w1_out, w2_out=w2_out, cgrp=cgrp)
        weight_specs = [
            pl.BlockSpec((nblocks, w1_in, w1_out), lambda i: (0, 0, 0)),   # resident
            pl.BlockSpec((nblocks, w1_out, w2_out), lambda i: (0, 0, 0)),  # resident
            pl.BlockSpec((1, out_features), lambda i: (0, 0)),             # resident
        ]
        scratch = [pltpu.VMEM((0, 0), compute_dtype)]  # placeholder, sized below
        # NOTE: with pipeline_mode=pl.Buffered(1) on the three specs above the
        # resident weights would be single-buffered (halves their VMEM); left off
        # here for API portability.  If the weights alone exceed the VMEM budget the
        # proper fix is a second grid axis tiling out_features (not implemented).

    # ---- batch tiling ----
    per_row_pipelined = (n + out_features) * itemsize
    tile_b = _choose_tile_b(batch, per_row_pipelined, per_row_scratch,
                            resident_bytes, granule, vmem_cap, tile_b_target)
    b_pad = _round_up(batch, tile_b)
    xv_p = jnp.pad(xv, ((0, b_pad - batch), (0, 0))) if b_pad != batch else xv
    grid = (b_pad // tile_b,)

    if not use_dense:
        scratch = [pltpu.VMEM((tile_b, nblocks * w1_out), compute_dtype)]

    io_tile_bytes = tile_b * per_row_pipelined
    scratch_bytes = tile_b * per_row_scratch
    need = 2 * io_tile_bytes + 2 * resident_bytes + scratch_bytes + (2 << 20)
    vmem_limit = int(min(max(need * 5 // 4, 32 * 2**20), vmem_cap))

    in_specs = [pl.BlockSpec((tile_b, n), lambda i: (i, 0))] + weight_specs
    out = pl.pallas_call(
        kernel,
        out_shape=jax.ShapeDtypeStruct((b_pad, out_features), out_dtype),
        grid=grid,
        in_specs=in_specs,
        out_specs=pl.BlockSpec((tile_b, out_features), lambda i: (i, 0)),
        scratch_shapes=scratch,
        compiler_params=pltpu.CompilerParams(
            dimension_semantics=("parallel",),
            vmem_limit_bytes=vmem_limit),
    )(xv_p, *operands[1:])

    out = out[:batch]
    if not use_dense:
        # Kernel emitted block-ordered columns (k2*w2_out + q2); the monarch output
        # column order is (q2*nblocks + k2).  One output-sized XLA transpose here
        # (review option (b)) instead of an nblocks x densified stage-2 weight.
        out = out.reshape(batch, nblocks, w2_out)
        out = jnp.swapaxes(out, 1, 2).reshape(batch, out_features)
    return out.reshape(orig_shape[:-1] + (out_features,))


# ----------------------------------------------------------------------------- init
def init_monarch_params(key, in_features, out_features, n_blocks=4, bias=False):
    """Deterministic init matching MonarchLinear.reset_parameters shapes/bounds."""
    assert in_features % n_blocks == 0 and out_features % n_blocks == 0
    ib = in_features // n_blocks
    ob = out_features // n_blocks
    if in_features < out_features:
        w1_shape, w2_shape = (n_blocks, ib, ib), (n_blocks, ob, ib)
    else:
        w1_shape, w2_shape = (n_blocks, ob, ib), (n_blocks, ob, ob)

    k1, k2, k3 = jax.random.split(key, 3)
    gain = math.sqrt(2.0 / (1.0 + 5.0))  # leaky_relu gain with param sqrt(5)

    def init_w(k, shape):
        fan_in = shape[-1]
        bound = math.sqrt(3.0) * gain / math.sqrt(fan_in)
        return jax.random.uniform(k, shape, jnp.float32, -bound, bound)

    w1 = init_w(k1, w1_shape)
    w2 = init_w(k2, w2_shape)
    b = None
    if bias:
        bound = 1.0 / math.sqrt(out_features)
        b = jax.random.uniform(k3, (out_features,), jnp.float32, -bound, bound)
    return w1, w2, b


if __name__ == "__main__":
    key = jax.random.PRNGKey(0)
    kx, kp, kx2, kp2 = jax.random.split(key, 4)

    # ---- small-block config (module-typical demo sizes): dense-folded path ----
    in_features, out_features, n_blocks = 32, 64, 4
    x = jax.random.normal(kx, (2, 8, in_features), jnp.float32)
    w1, w2, b = init_monarch_params(kp, in_features, out_features, n_blocks, bias=True)

    out = jax.block_until_ready(jax.jit(monarch_forward)(x, w1, w2, b))
    ref = monarch_reference(x, w1, w2, b)
    assert out.shape == (2, 8, out_features), out.shape
    assert jnp.allclose(out, ref, atol=1e-5, rtol=1e-5), float(jnp.max(jnp.abs(out - ref)))

    out_nb = jax.block_until_ready(jax.jit(monarch_forward)(x, w1, w2, None))
    ref_nb = monarch_reference(x, w1, w2, None)
    assert jnp.allclose(out_nb, ref_nb, atol=1e-5, rtol=1e-5), \
        float(jnp.max(jnp.abs(out_nb - ref_nb)))

    # ---- >=128 per-block dims: true block-diagonal path (no densified stage 2) ----
    in2 = out2 = 512
    x2 = jax.random.normal(kx2, (4, 32, in2), jnp.float32)
    w1b, w2b, bb = init_monarch_params(kp2, in2, out2, 4, bias=True)
    o2 = jax.block_until_ready(jax.jit(monarch_forward)(x2, w1b, w2b, bb))
    r2 = monarch_reference(x2, w1b, w2b, bb)
    assert o2.shape == (4, 32, out2), o2.shape
    assert jnp.allclose(o2, r2, atol=1e-3, rtol=1e-3), float(jnp.max(jnp.abs(o2 - r2)))

    print("KERNEL_OK")
</pallas_src>

<mosaic_0001>
module attributes {stable_mosaic.version = 11 : i64} {
  func.func @_dense_kernel(%arg0: i32, %arg1: memref<8x32xf32, #tpu.memory_space<vmem>>, %arg2: memref<32x64xf32, #tpu.memory_space<vmem>>, %arg3: memref<1x64xf32, #tpu.memory_space<vmem>>, %arg4: memref<8x64xf32, #tpu.memory_space<vmem>>) attributes {dimension_semantics = [#tpu.dimension_semantics<parallel>], iteration_bounds = array<i64: 2>, scalar_prefetch = 0 : i64, scratch_operands = 0 : i64, tpu.core_type = #tpu.core_type<tc>, window_params = [{transform_indices = @transform_0, window_bounds = array<i64: 8, 32>}, {pipeline_mode = #tpu.pipeline_mode<synchronous>, transform_indices = @transform_1, window_bounds = array<i64: 32, 64>}, {pipeline_mode = #tpu.pipeline_mode<synchronous>, transform_indices = @transform_2, window_bounds = array<i64: 1, 64>}, {transform_indices = @transform_3, window_bounds = array<i64: 8, 64>}]} {
    %c0 = arith.constant 0 : index
    %c0_0 = arith.constant 0 : index
    %0 = vector.load %arg1[%c0, %c0_0] : memref<8x32xf32, #tpu.memory_space<vmem>>, vector<8x32xf32>
    %c0_1 = arith.constant 0 : index
    %c0_2 = arith.constant 0 : index
    %1 = vector.load %arg2[%c0_1, %c0_2] : memref<32x64xf32, #tpu.memory_space<vmem>>, vector<32x64xf32>
    %cst = arith.constant dense<0.000000e+00> : vector<8x64xf32>
    %2 = tpu.matmul %0, %1, %cst {dimension_numbers = #tpu.dot_dimension_numbers<[1], [0], [0], [1], [0, 0, 1, 1], [], []>} : vector<8x32xf32>, vector<32x64xf32>, vector<8x64xf32> -> vector<8x64xf32>
    %c0_3 = arith.constant 0 : index
    %c0_4 = arith.constant 0 : index
    %3 = vector.load %arg3[%c0_3, %c0_4] : memref<1x64xf32, #tpu.memory_space<vmem>>, vector<1x64xf32>
    %4 = vector.broadcast %3 : vector<1x64xf32> to vector<8x64xf32>
    %5 = arith.addf %2, %4 : vector<8x64xf32>
    %c0_5 = arith.constant 0 : index
    %c0_6 = arith.constant 0 : index
    %6 = vector.load %arg4[%c0_5, %c0_6] : memref<8x64xf32, #tpu.memory_space<vmem>>, vector<8x64xf32>
    tpu.vector_store %arg4[%c0_5, %c0_6], %5 {strides = array<i32>} : memref<8x64xf32, #tpu.memory_space<vmem>>, vector<8x64xf32>,
    return
  }
  func.func @transform_0(%arg0: i32) -> (i32, i32) {
    %c0_i32 = arith.constant 0 : i32
    %c0_i32_0 = arith.constant 0 : i32
    return %arg0, %c0_i32 : i32, i32
  }
  func.func @transform_1(%arg0: i32) -> (i32, i32) {
    %c0_i32 = arith.constant 0 : i32
    %c0_i32_0 = arith.constant 0 : i32
    %c0_i32_1 = arith.constant 0 : i32
    return %c0_i32, %c0_i32_0 : i32, i32
  }
  func.func @transform_2(%arg0: i32) -> (i32, i32) {
    %c0_i32 = arith.constant 0 : i32
    %c0_i32_0 = arith.constant 0 : i32
    %c0_i32_1 = arith.constant 0 : i32
    return %c0_i32, %c0_i32_0 : i32, i32
  }
  func.func @transform_3(%arg0: i32) -> (i32, i32) {
    %c0_i32 = arith.constant 0 : i32
    %c0_i32_0 = arith.constant 0 : i32
    return %arg0, %c0_i32 : i32, i32
  }
}

</mosaic_0001>

<bundles_post_ra>
// kernel: monarch_forward.1
= control target key start
LH: loop header
LB: loop body
LE: loop exit
PB: predicated region body
PF: predicated region fallthrough
CT: control target
= control target key end

     0   :  { %8 = vsyncpa [#allocation3], 0  ;;  %s511_s0 = inlined_call_operand.vmem [shape: f32[16,32], index: 0, kind: input, shape index: {}]   ;;  %s512_s1 = inlined_call_operand.vmem [shape: f32[32,64], index: 1, kind: input, shape index: {}]   ;;  %s513_s2 = inlined_call_operand.vmem [shape: f32[1,64], index: 2, kind: input, shape index: {}]   ;;  %s514_s3 = inlined_call_operand.hbm [shape: f32[16,64], index: 3, kind: output, shape index: {}]  }
   0x1   :  { %10 = vsyncpa [#allocation3 + $0x1], 0  ;;  %s411_s12 = smov 0   ;;  %s413_s13 = smov 0  }
   0x2   :  { %s415_s14 = smov 0   ;;  %s417_s15 = smov 0  }
   0x3 LB: > { %s432_s16 = sadd.s32 4294967295, %s389_s15   ;;  %s276_s17 = sadd.s32 4294967294, %s389_s15   ;;  %s389_s15 = sphi %s417_s15, %s520_s15   ;;  %s385_s14 = sphi %s415_s14, %s519_s14   ;;  %s381_s13 = sphi %s413_s13, %s518_s13   ;;  %s377_s12 = sphi %s411_s12, %s517_s12  }
   0x4   : > { %s436_s18 = sadd.s32 1, %s389_s15   ;;  %s91_s19 = sadd.s32 1, %s385_s14 }
   0x5   : > { %s88_s20 = ssub.s32 %s389_s15, %s436_s18  ;;  %p101_p0 = scmp.ne.s32.totalorder %s385_s14, %s381_s13 }
   0x6   : > { %p89_p1 = scmp.eq.s32.totalorder %s88_s20, 0  ;;  %p102_p2 = scmp.eq.s32.totalorder %s432_s16, 1 }
   0x7   : > { %p107_p3 = scmp.ne.s32.totalorder %s381_s13, %s377_s12  ;;  %p108_p4 = scmp.eq.s32.totalorder %s276_s17, 1 }
   0x8   : > { %s447_s21 = scalar_select %p89_p1, %s385_s14, %s91_s19  }
   0x9   : > { %p449_p5 = por %p102_p2, %p101_p0  ;;  %p453_p6 = por %p108_p4, %p107_p3 }
   0xa   : > { %p279_p7 = scmp.ge.s32.totalorder %s389_s15, 1  ;;  %p139_p8 = scmp.lt.s32.totalorder %s389_s15, 3 }
   0xc   : > { %p140_p9 = pnand %p279_p7, %p139_p8 }
   0xd   : > { %p162_p10 = scmp.lt.s32.totalorder (!%p140_p9), %s432_s16, 1  ;;  %s159_s10 = sand.u32 (!%p140_p9), 1, %s381_s13  }
   0xe   : > { %143 = sbr.rel (%p140_p9) target bundleno = 158 (0x9e), region = 32  ;;  %s280_s11 = sshll.u32 (!%p140_p9), %s159_s10, 3 }
   0xf   : > { %s284_s17 = sshll.u32 (!%p140_p9), %s432_s16, 3  ;;  %s161_s27 = scalar_lea.vmem (!%p140_p9), [#allocation2], %s280_s11 }
  0x10   : > { %s212_s24 = scalar_lea.hbm (!%p140_p9), %s514_s3, %s284_s17  ;;  %s214_s28 = sshll.u32 (!%p140_p9), %s161_s27, 4  ;;  %s215_s28 = int_to_ptr.vmem [resolvable:$true] %s214_s28 }
  0x11   : > { %s216_s29 = sshll.u32 (!%p140_p9), %s212_s24, 4  ;;  %s347_s7 = scalar_lea.hbm (!%p140_p9), %s514_s3, 16  ;;  %s217_s29 = int_to_ptr.hbm [resolvable:$true] %s216_s29 }
  0x13   : > { %v170_v0 = vld [vmem:[%s512_s1 + $0x18] sm:$0xff]  ;;  %v169_v1 = vld [vmem:[%s512_s1 + $0x10] sm:$0xff]  ;;  %v168_v2 = vld [vmem:[%s512_s1 + $0x8] sm:$0xff]  ;;  %s163_s30 = scalar_select %p162_p10, %s432_s16, 1  ;;  %vm175_vm0 = vcmask 261120   ;;  %vm199_vm1 = vcmask 523264  }
  0x14   : > { %191 = vmatpush.msra.mxu0 %v170_v0  ;;  %v167_v3 = vld [vmem:[%s512_s1] sm:$0xff]  ;;  %s341_s16 = sshra.s32 %s217_s29, 4  ;;  %s342_s16 = int_to_ptr.hbm [resolvable:$true] %s341_s16 }
  0x15   : > { %s281_s6 = sshll.u32 %s163_s30, 3  ;;  %v326_v5 = vld [vmem:[%s513_s2] ss:$0 sm:$0xff]  ;;  %s202_s30 = scalar_lea.sflag [#allocation3], %s159_s10 }
  0x16   : > { %192 = vmatpush.msra.mxu0 %v169_v1  ;;  %s165_s9 = scalar_lea.vmem %s511_s0, %s281_s6  ;;  %s343_s4 = scalar_lea.hbm %s342_s16, 8 }
  0x17   : > { %v166_v4 = vld [vmem:[%s165_s9] sm:$0xff]  ;;  %p344_p11 = scmp.ne.s32.totalorder %s342_s16, %s343_s4  ;;  %p348_p0 = scmp.lt.s32.totalorder %s342_s16, %s514_s3 }
  0x18   : > { %193 = vmatpush.msra.mxu0 %v168_v2  ;;  %p349_p1 = scmp.lt.s32.totalorder %s347_s7, %s343_s4 }
  0x19   : > { %p345_p12 = pnand %p344_p11, %p449_p5 }
  0x1a   : > { %194 = vmatpush.msra.mxu0 %v167_v3  ;;  %p350_p2 = por %p349_p1, %p348_p0 }
  0x1b   : > { %282 = vmatmul.msk.f32.vlgmr.msra.gmra.mxu0 %vm175_vm0, %v166_v4  ;;  %p346_p13 = pneg %p345_p12 }
  0x1d   : > { %p351_p3 = pnand %p350_p2, %p346_p13 }
  0x98   : > { %v196_v6 = vpop.f32.mrf.mxu0 }
  0x99   : > { %v197_v7 = vadd.f32 %v326_v5, %v196_v6 }
  0x9b   : > { %200 = vst.msk [vmem:[%s161_s27] sm:$0xff] %vm199_vm1, %v197_v7 }
  0x9c   : > { %354 = shalt.err (!%p351_p3)
}
  0x9d   : > { %287 = dma.vmem_to_hbm [thread:$0]  (%p449_p5), %s215_s28, 128, %s217_s29, %s202_s30  }
  0x9e PF: > { %p293_p4 = scmp.ge.s32.totalorder %s389_s15, 2  ;;  %s228_s10 = sand.u32 1, %s377_s12  }
  0x9f   : > { %s229_s11 = scalar_lea.sflag [#allocation3], %s228_s10 }
  0xa0   : > { %p290_p7 = pnand %p293_p4, %p453_p6 }
  0xa2   : > { %p291_p8 = pneg %p290_p7 }
  0xa4   : > { %372 = dma.done.wait (%p291_p8), %s229_s11, 128  }
  0xa5   : > { %374 = vsyncadd (%p291_p8), %s229_s11, 4294967168  ;;  %p13_p9 = scmp.ge.s32.totalorder %s436_s18, 4   ;;  %s517_s12 = smov %s381_s13 }
  0xa6   : > { %s518_s13 = smov %s385_s14  ;;  %s519_s14 = smov %s447_s21 }
  0xa7   : > { %s520_s15 = smov %s436_s18  ;;  %15 = sbr.rel (!%p13_p9) target bundleno = 3 (0x3), region = 67 }
  0xac   :  { %235 = vsyncpa [#allocation3], 1 }
  0xad   :  { %237 = vsyncpa [#allocation3 + $0x1], 1 }

</bundles_post_ra>
